<compile_context>
chip_gen: v6e
topology: v6e:2x2x1
jax: 0.10.0
libtpu: 0.0.40
codegen_flags: <defaults>
</compile_context>

<pallas_src>
import functools

import jax
import jax.numpy as jnp
import numpy as np
from jax import lax
from jax.experimental import pallas as pl
from jax.experimental.pallas import tpu as pltpu


def _laplacian_kernel(a_ref, l_ref, *, norm_laplacian: bool):
    """One grid step = TB batch elements. a_ref / l_ref blocks are (TB, N, N)."""
    a = a_ref[...]                                   # (TB, N, N) f32
    n = a.shape[1]

    # Diagonal mask built once from 2-D iotas (broadcast over the batch dim).
    row = lax.broadcasted_iota(jnp.int32, (n, n), 0)
    col = lax.broadcasted_iota(jnp.int32, (n, n), 1)
    diag = row == col                                # (N, N) bool

    # Degree: row-sum of A (torch.sum(A, dim=2)) — lane reduction on the VPU/XLU.
    d = jnp.sum(a, axis=2, keepdims=True)            # (TB, N, 1)

    if norm_laplacian:
        # d[d == 0] = 1 ; d = 1/sqrt(d)
        d = jnp.where(d == 0, jnp.ones_like(d), d)
        dis = lax.rsqrt(d)                           # (TB, N, 1)  (EUP)
        # D^-1/2 A D^-1/2 is pure row + column scaling (D is diagonal):
        s = a * dis                                  # scale rows    (sublane bcast)
        s = s * jnp.swapaxes(dis, 1, 2)              # scale columns (lane bcast)
        # L = I - S, with the identity fused into the select.
        l = jnp.where(diag, 1.0 - s, -s)
    else:
        # L = D - A, identity fused: diag -> d_i - a_ii, off-diag -> -a_ij.
        l = jnp.where(diag, d - a, -a)

    l_ref[...] = l.astype(l_ref.dtype)


def _pick_batch_tile(B: int, N: int, itemsize: int, target_bytes: int = 2 << 20) -> int:
    """Pick TB so one (TB, N, N) buffer is ~target_bytes, with >=2 grid steps."""
    per_elem = N * N * itemsize
    tb = max(1, target_bytes // per_elem)
    if B >= 2:
        # Keep at least two grid steps so the "parallel" axis can be split
        # across the two TensorCores on v7x.
        tb = min(tb, -(-B // 2))
    return int(min(tb, B))


@functools.partial(jax.jit, static_argnames=("norm_laplacian", "donate_input"))
def lap_pe_laplacian(A: jax.Array,
                     norm_laplacian: bool = False,
                     donate_input: bool = False) -> jax.Array:
    """Pallas-computed graph Laplacian. A: (B, N, N) float32 -> (B, N, N).

    donate_input=True aliases the output onto A's buffer (only beneficial if
    the caller actually donates A / no longer needs it).
    """
    B, N, N2 = A.shape
    assert N == N2

    tb = _pick_batch_tile(B, N, A.dtype.itemsize)
    B_pad = pl.cdiv(B, tb) * tb
    A_in = A if B_pad == B else jnp.pad(A, ((0, B_pad - B), (0, 0), (0, 0)))

    # 2 input + 2 output double-buffers of one tile each, plus headroom for
    # in-kernel temporaries. Capped so it stays legal on v7x (64 MiB VMEM).
    tile_bytes = tb * N * N * A.dtype.itemsize
    vmem_limit = int(min(64 << 20, max(32 << 20, 4 * tile_bytes + 8 << 20)))

    kernel = functools.partial(_laplacian_kernel, norm_laplacian=norm_laplacian)
    L = pl.pallas_call(
        kernel,
        out_shape=jax.ShapeDtypeStruct((B_pad, N, N), A.dtype),
        grid=(B_pad // tb,),
        in_specs=[pl.BlockSpec((tb, N, N), lambda b: (b, 0, 0))],
        out_specs=pl.BlockSpec((tb, N, N), lambda b: (b, 0, 0)),
        input_output_aliases=({0: 0} if donate_input else {}),
        compiler_params=pltpu.CompilerParams(
            dimension_semantics=("parallel",),
            vmem_limit_bytes=vmem_limit,
        ),
    )(A_in)
    return L if B_pad == B else L[:B]


def lap_pe_forward(A: jax.Array, num_vectors: int,
                   norm_laplacian: bool = False) -> np.ndarray:
    """Full LapPE.forward: Pallas Laplacian + host eigendecomposition."""
    assert num_vectors >= 1
    L = jax.block_until_ready(lap_pe_laplacian(A, norm_laplacian=norm_laplacian))
    # TODO(synk): general (non-symmetric) eig has no Pallas/TPU equivalent;
    # done on host with numpy to match torch.linalg.eig semantics.
    L_host = np.asarray(L)
    _values, vectors = np.linalg.eig(L_host)          # columns = eigenvectors
    real = np.real(vectors).astype(np.float32)
    return real[:, :num_vectors]                      # slice rows, as in the reference


if __name__ == "__main__":
    # Small deterministic example: batch=2, N=16 nodes, num_vectors=4.
    key = jax.random.PRNGKey(0)
    B, N, num_vectors = 2, 16, 4

    # Symmetric 0/1 adjacency with zero diagonal.
    u = jax.random.uniform(key, (B, N, N), dtype=jnp.float32)
    sym = 0.5 * (u + jnp.swapaxes(u, 1, 2))
    eye = jnp.eye(N, dtype=jnp.float32)[None]
    A = (sym > 0.5).astype(jnp.float32) * (1.0 - eye)

    # --- Pallas Laplacian vs. plain-JAX reference, both branches -----------
    d = jnp.sum(A, axis=2)

    L_ref_un = eye * d[:, :, None] - A
    L_pal_un = jax.block_until_ready(lap_pe_laplacian(A, norm_laplacian=False))
    np.testing.assert_allclose(np.asarray(L_pal_un), np.asarray(L_ref_un),
                               rtol=1e-6, atol=1e-6)

    dc = jnp.where(d == 0, 1.0, d)
    dis = 1.0 / jnp.sqrt(dc)
    L_ref_n = eye - A * dis[:, :, None] * dis[:, None, :]
    L_pal_n = jax.block_until_ready(lap_pe_laplacian(A, norm_laplacian=True))
    np.testing.assert_allclose(np.asarray(L_pal_n), np.asarray(L_ref_n),
                               rtol=1e-5, atol=1e-6)

    # --- Full forward pass (Pallas Laplacian + host eig) -------------------
    out_unnorm = lap_pe_forward(A, num_vectors, norm_laplacian=False)
    assert out_unnorm.shape == (B, num_vectors, N)

    out_norm = lap_pe_forward(A, num_vectors, norm_laplacian=True)
    assert out_norm.shape == (B, num_vectors, N)

    print("KERNEL_OK")
</pallas_src>

<mosaic_0001>
module attributes {stable_mosaic.version = 11 : i64} {
  func.func @_laplacian_kernel(%arg0: i32, %arg1: memref<1x16x16xf32, #tpu.memory_space<vmem>>, %arg2: memref<1x16x16xf32, #tpu.memory_space<vmem>>) attributes {dimension_semantics = [#tpu.dimension_semantics<parallel>], iteration_bounds = array<i64: 2>, scalar_prefetch = 0 : i64, scratch_operands = 0 : i64, tpu.core_type = #tpu.core_type<tc>, window_params = [{transform_indices = @transform_0, window_bounds = array<i64: 1, 16, 16>}, {transform_indices = @transform_1, window_bounds = array<i64: 1, 16, 16>}]} {
    %c0 = arith.constant 0 : index
    %c0_0 = arith.constant 0 : index
    %c0_1 = arith.constant 0 : index
    %0 = vector.load %arg1[%c0, %c0_0, %c0_1] : memref<1x16x16xf32, #tpu.memory_space<vmem>>, vector<1x16x16xf32>
    %1 = tpu.iota {dimensions = array<i32: 0>} : vector<16x16xi32>
    %2 = tpu.iota {dimensions = array<i32: 1>} : vector<16x16xi32>
    %3 = arith.cmpi eq, %1, %2 : vector<16x16xi32>
    %cst = arith.constant dense<0.000000e+00> : vector<1x16xf32>
    %4 = vector.multi_reduction <add>, %0, %cst [2] : vector<1x16x16xf32> to vector<1x16xf32>
    %5 = vector.shape_cast %4 : vector<1x16xf32> to vector<1x16x1xf32>
    %6 = vector.broadcast %5 : vector<1x16x1xf32> to vector<1x16x16xf32>
    %7 = arith.subf %6, %0 : vector<1x16x16xf32>
    %cst_2 = arith.constant 0.000000e+00 : f32
    %8 = vector.broadcast %cst_2 : f32 to vector<1x16x16xf32>
    %9 = arith.subf %8, %0 : vector<1x16x16xf32>
    %10 = vector.shape_cast %3 : vector<16x16xi1> to vector<1x16x16xi1>
    %11 = arith.select %10, %7, %9 : vector<1x16x16xi1>, vector<1x16x16xf32>
    %c0_3 = arith.constant 0 : index
    %c0_4 = arith.constant 0 : index
    %c0_5 = arith.constant 0 : index
    %12 = vector.load %arg2[%c0_3, %c0_4, %c0_5] : memref<1x16x16xf32, #tpu.memory_space<vmem>>, vector<1x16x16xf32>
    tpu.vector_store %arg2[%c0_3, %c0_4, %c0_5], %11 {strides = array<i32>} : memref<1x16x16xf32, #tpu.memory_space<vmem>>, vector<1x16x16xf32>,
    return
  }
  func.func @transform_0(%arg0: i32) -> (i32, i32, i32) {
    %c0_i32 = arith.constant 0 : i32
    %c0_i32_0 = arith.constant 0 : i32
    %c0_i32_1 = arith.constant 0 : i32
    return %arg0, %c0_i32, %c0_i32_0 : i32, i32, i32
  }
  func.func @transform_1(%arg0: i32) -> (i32, i32, i32) {
    %c0_i32 = arith.constant 0 : i32
    %c0_i32_0 = arith.constant 0 : i32
    %c0_i32_1 = arith.constant 0 : i32
    return %arg0, %c0_i32, %c0_i32_0 : i32, i32, i32
  }
}

</mosaic_0001>

<bundles_post_ra>
// kernel: lap_pe_laplacian.1
= control target key start
LH: loop header
LB: loop body
LE: loop exit
PB: predicated region body
PF: predicated region fallthrough
CT: control target
= control target key end

     0   :  { %6 = vsyncpa [#allocation3], 0  ;;  %s580_s0 = inlined_call_operand.hbm [shape: f32[2,16,16], index: 0, kind: input, shape index: {}]   ;;  %s581_s1 = inlined_call_operand.hbm [shape: f32[2,16,16], index: 1, kind: output, shape index: {}]  }
   0x1   :  { %8 = vsyncpa [#allocation3 + $0x1], 0 }
   0x2   :  { %9 = vsyncpa [#allocation4], 0 }
   0x3   :  { %11 = vsyncpa [#allocation4 + $0x1], 0  ;;  %s422_s6 = smov 0   ;;  %s424_s7 = smov 0  }
   0x4   :  { %s426_s8 = smov 0   ;;  %s428_s9 = smov 0  }
   0x5 LB: > { %s443_s10 = sadd.s32 4294967295, %s404_s9   ;;  %s246_s11 = sadd.s32 4294967294, %s404_s9   ;;  %s404_s9 = sphi %s428_s9, %s596_s9   ;;  %s400_s8 = sphi %s426_s8, %s595_s8   ;;  %s396_s7 = sphi %s424_s7, %s594_s7   ;;  %s392_s6 = sphi %s422_s6, %s593_s6  }
   0x6   : > { %s447_s12 = sadd.s32 1, %s404_s9   ;;  %s24_s13 = sadd.s32 1, %s400_s8 }
   0x7   : > { %s21_s14 = ssub.s32 %s404_s9, %s447_s12  ;;  %p31_p0 = scmp.ne.s32.totalorder %s400_s8, %s396_s7 }
   0x8   : > { %p22_p1 = scmp.eq.s32.totalorder %s21_s14, 0  ;;  %p32_p2 = scmp.eq.s32.totalorder %s404_s9, 0 }
   0x9   : > { %p37_p3 = scmp.ne.s32.totalorder %s396_s7, %s392_s6  ;;  %p38_p4 = scmp.eq.s32.totalorder %s443_s10, 0 }
   0xa   : > { %s459_s15 = scalar_select %p22_p1, %s400_s8, %s24_s13  }
   0xb   : > { %p461_p5 = por %p32_p2, %p31_p0  ;;  %p465_p6 = por %p38_p4, %p37_p3 }
   0xc   : > { %p61_p7 = scmp.eq.s32.totalorder %s443_s10, 1  ;;  %p67_p8 = scmp.eq.s32.totalorder %s246_s11, 1 }
   0xd   : > { %s585_s17 = scalar_select %p465_p6, 1, 0 }
   0xe   : > { %p274_p10 = scmp.lt.s32.totalorder %s404_s9, 2  ;;  %p472_p11 = por %p61_p7, %p31_p0 }
   0xf   : > { %p476_p12 = por %p67_p8, %p37_p3  ;;  %s87_s20 = sand.u32 1, %s400_s8  }
  0x10   : > { %s586_s18 = scalar_select %p472_p11, 1, 0 }
  0x11   : > { %s587_s19 = scalar_select %p476_p12, 1, 0 }
  0x12   : > { %s260_s21 = sshll.u32 %s404_s9, 8  ;;  %s249_s22 = sshll.u32 %s87_s20, 4 }
  0x13   : > { %s485_s25 = scalar_lea.hbm %s580_s0, %s260_s21  ;;  %s91_s26 = scalar_lea.vmem [#allocation2], %s249_s22 }
  0x14   : > { %s98_s27 = sshll.u32 %s91_s26, 4  ;;  %p489_p13 = pnand %p274_p10, %p461_p5  ;;  %s493_s27 = int_to_ptr.vmem [resolvable:$true] %s98_s27 }
  0x15   : > { %s495_s29 = scalar_lea.sflag [#allocation3], %s87_s20  ;;  %s312_s30 = scalar_lea.hbm %s485_s25, 256 }
  0x16   : > { %p313_p0 = scmp.ne.s32.totalorder %s485_s25, %s312_s30  ;;  %p314_p1 = pneg %p489_p13 }
  0x17   : > { %s317_s4 = scalar_lea.hbm %s580_s0, 512  ;;  %p318_p4 = scmp.lt.s32.totalorder %s485_s25, %s580_s0 }
  0x18   : > { %p315_p2 = pnand %p314_p1, %p313_p0  ;;  %p319_p5 = scmp.lt.s32.totalorder %s317_s4, %s312_s30 }
  0x1a   : > { %p316_p3 = pneg %p315_p2  ;;  %p320_p7 = por %p319_p5, %p318_p4 }
  0x1c   : > { %p321_p8 = pnand %p320_p7, %p316_p3 }
  0x1e   : > { %324 = shalt.err (!%p321_p8)
}
  0x1f   : > { %s325_s13 = scalar_lea.vmem %s493_s27, 256  ;;  %s406_s14 = smov [#allocation2]  }
  0x20   : > { %p326_p10 = scmp.ne.s32.totalorder %s493_s27, %s325_s13  ;;  %s330_s16 = sshll.u32 %s406_s14, 4  ;;  %s331_s16 = int_to_ptr.vmem [resolvable:$false] %s330_s16 }
  0x21   : > { %s332_s20 = scalar_lea.vmem %s331_s16, 512  ;;  %p333_p2 = scmp.lt.s32.totalorder %s493_s27, %s331_s16 }
  0x22   : > { %p328_p9 = pnand %p326_p10, %p314_p1  ;;  %p334_p12 = scmp.lt.s32.totalorder %s332_s20, %s325_s13 }
  0x24   : > { %p329_p0 = pneg %p328_p9  ;;  %p335_p11 = por %p334_p12, %p333_p2 }
  0x26   : > { %p336_p6 = pnand %p335_p11, %p329_p0 }
  0x28   : > { %339 = shalt.err (!%p336_p6)
}
  0x29   : > { %s407_s21 = smov 128   ;;  %s408_s22 = smov 8  }
  0x2a   : > { %269 = dma.hbm_to_vmem [thread:$0]  (!%p489_p13), %s485_s25, 256, %s493_s27, %s495_s29, %s407_s21, %s407_s21, %s408_s22  }
  0x2b   : > { %p252_p9 = scmp.ge.s32.totalorder %s404_s9, 1  ;;  %p106_p1 = scmp.lt.s32.totalorder %s404_s9, 3 }
  0x2d   : > { %p107_p3 = pnand %p252_p9, %p106_p1 }
  0x2e   : > { %s519_s23 = sand.u32 (!%p107_p3), 1, %s396_s7   ;;  %p589_p6 = scmp.ne.s32.totalorder (!%p107_p3), %s585_s17, 0 }
  0x2f   : > { %110 = sbr.rel (%p107_p3) target bundleno = 214 (0xd6), region = 24  ;;  %s253_s24 = sshll.u32 (!%p107_p3), %s519_s23, 4 }
  0x30   : > { %s113_s26 = scalar_lea.sflag (!%p107_p3), [#allocation3], %s519_s23  ;;  %s116_s30 = scalar_lea.vmem (!%p107_p3), [#allocation2], %s253_s24 }
  0x34   : > { %383 = dma.done.wait (%p589_p6), %s113_s26, 256  }
  0x35   : > { %385 = vsyncadd (%p589_p6), %s113_s26, 4294967040  ;;  %vm144_vm0 = vcmask 130048   ;;  %v135_v0 = vld [vmem:[%s116_s30] sm:$0xff]  ;;  %v136_v1 = vld [vmem:[%s116_s30 + $0x8] sm:$0xff]  ;;  %v137_v4 = vlaneseq  ;;  %s134_s17 = scalar_lea.vmem [#allocation5], %s253_s24  ;;  %s261_s27 = sshll.u32 %s443_s10, 8 }
  0x36   : > { %v145_v2 = vsel %vm144_vm0, %v135_v0, 0.0  ;;  %v148_v3 = vsel %vm144_vm0, %v136_v1, 0.0  ;;  %v153_v7 = vsub.f32 0.0, %v135_v0  ;;  %s173_s25 = sshll.u32 %s134_s17, 4  ;;  %v154_v11 = vsub.f32 0.0, %v136_v1  ;;  %s534_s2 = scalar_lea.hbm %s581_s1, %s261_s27  ;;  %s536_s25 = int_to_ptr.vmem [resolvable:$true] %s173_s25 }
  0x37   : > { %146 = vadd.xlane.f32.xlu0 %v145_v2  ;;  %v138_v5 = vshrl.u32 %v137_v4, 7  ;;  %v141_v6 = vand.u32 127, %v137_v4  ;;  %s160_s10 = scalar_lea.sflag [#allocation4], %s519_s23  ;;  %s340_s3 = scalar_lea.vmem %s536_s25, 256 }
  0x38   : > { %p341_p11 = scmp.ne.s32.totalorder %s536_s25, %s340_s3  ;;  %p590_p12 = scmp.ne.s32.totalorder %s586_s18, 0 }
  0x39   : > { %vm142_vm1 = vcmp.eq.s32.totalorder %v138_v5, %v141_v6  ;;  %v139_v9 = vadd.s32 8, %v138_v5  ;;  %s409_s4 = smov [#allocation5]  }
  0x3a   : > { %p342_p13 = pnand %p341_p11, %p590_p12  ;;  %s344_s5 = sshll.u32 %s409_s4, 4  ;;  %s345_s5 = int_to_ptr.vmem [resolvable:$false] %s344_s5 }
  0x3b   : > { %149 = vadd.xlane.f32.xlu0 %v148_v3  ;;  %vm143_vm2 = vcmp.eq.s32.totalorder %v139_v9, %v141_v6  ;;  %s346_s11 = scalar_lea.vmem %s345_s5, 512  ;;  %p347_p5 = scmp.lt.s32.totalorder %s536_s25, %s345_s5 }
  0x3c   : > { %p343_p4 = pneg %p342_p13  ;;  %p348_p7 = scmp.lt.s32.totalorder %s346_s11, %s340_s3 }
  0x3e   : > { %p349_p8 = por %p348_p7, %p347_p5 }
  0x40   : > { %p350_p10 = pnand %p349_p8, %p343_p4 }
  0xc0   : > { %v147_v8 = vpop.xlane.xlu0 %146 }
  0xc1   : > { %v151_v10 = vsub.f32 %v147_v8, %v135_v0 }
  0xc3   : > { %v155_v12 = vsel %vm142_vm1, %v151_v10, %v153_v7 }
  0xc4   : > { %157 = vst.msk [vmem:[%s134_s17] sm:$0xff] %vm144_vm0, %v155_v12  ;;  %v150_v13 = vpop.xlane.xlu0 %149 }
  0xc5   : > { %v152_v14 = vsub.f32 %v150_v13, %v136_v1 }
  0xc7   : > { %v156_v15 = vsel %vm143_vm2, %v152_v14, %v154_v11 }
  0xc8   : > { %158 = vst.msk [vmem:[%s134_s17 + $0x8] sm:$0xff] %vm144_vm0, %v156_v15 }
  0xc9   : > { %353 = shalt.err (!%p350_p10)
}
  0xca   : > { %s354_s13 = scalar_lea.hbm %s534_s2, 256  ;;  %s358_s20 = scalar_lea.hbm %s581_s1, 512 }
  0xcb   : > { %p355_p0 = scmp.ne.s32.totalorder %s534_s2, %s354_s13  ;;  %p359_p1 = scmp.lt.s32.totalorder %s534_s2, %s581_s1 }
  0xcc   : > { %p360_p3 = scmp.lt.s32.totalorder %s358_s20, %s354_s13 }
  0xcd   : > { %p356_p2 = pnand %p355_p0, %p590_p12 }
  0xce   : > { %p361_p6 = por %p360_p3, %p359_p1 }
  0xcf   : > { %p357_p9 = pneg %p356_p2 }
  0xd1   : > { %p362_p11 = pnand %p361_p6, %p357_p9 }
  0xd3   : > { %365 = shalt.err (!%p362_p11)
}
  0xd4   : > { %s410_s24 = smov 128   ;;  %s411_s26 = smov 8  }
  0xd5   : > { %264 = dma.vmem_to_hbm [thread:$0]  (%p590_p12), %s536_s25, 256, %s534_s2, %s160_s10, %s410_s24, %s410_s24, %s411_s26  }
  0xd6 PF: > { %s188_s30 = sand.u32 1, %s392_s6   ;;  %p591_p13 = scmp.ne.s32.totalorder %s587_s19, 0 }
  0xd7   : > { %p592_p4 = scmp.ge.s32.totalorder %s404_s9, 2  ;;  %s189_s17 = scalar_lea.sflag [#allocation4], %s188_s30 }
  0xd9   : > { %p271_p5 = pnand %p592_p4, %p591_p13 }
  0xdb   : > { %p272_p7 = pneg %p271_p5 }
  0xdd   : > { %387 = dma.done.wait (%p272_p7), %s189_s17, 256  }
  0xde   : > { %389 = vsyncadd (%p272_p7), %s189_s17, 4294967040  ;;  %p14_p8 = scmp.ge.s32.totalorder %s447_s12, 4   ;;  %s593_s6 = smov %s396_s7 }
  0xdf   : > { %s594_s7 = smov %s400_s8  ;;  %s595_s8 = smov %s459_s15 }
  0xe0   : > { %s596_s9 = smov %s447_s12  ;;  %16 = sbr.rel (!%p14_p8) target bundleno = 5 (0x5), region = 69 }
  0xe5   :  { %194 = vsyncpa [#allocation3], 1 }
  0xe6   :  { %196 = vsyncpa [#allocation3 + $0x1], 1 }
  0xe7   :  { %197 = vsyncpa [#allocation4], 1 }
  0xe8   :  { %199 = vsyncpa [#allocation4 + $0x1], 1 }

</bundles_post_ra>
